<compile_context>
chip_gen: v6e
topology: v6e:2x2x1
jax: 0.10.0
libtpu: 0.0.40
codegen_flags: <defaults>
</compile_context>

<pallas_src>
import functools
import math

import jax
import jax.numpy as jnp
from jax import lax
from jax.experimental import pallas as pl
from jax.experimental.pallas import tpu as pltpu


def _build_pos_embedding(emb_size: int, maxlen: int) -> jnp.ndarray:
    """Reference buffer construction, identical to the PyTorch module (plain JAX)."""
    den = jnp.exp(-jnp.arange(0, emb_size, 2, dtype=jnp.float32)
                  * (math.log(10000.0) / emb_size))                    # (E/2,)
    pos = jnp.arange(0, maxlen, dtype=jnp.float32).reshape(maxlen, 1)  # (L, 1)
    angles = pos * den                                                 # (L, E/2)
    pe = jnp.zeros((maxlen, emb_size), dtype=jnp.float32)
    pe = pe.at[:, 0::2].set(jnp.sin(angles))
    pe = pe.at[:, 1::2].set(jnp.cos(angles))
    return pe[:, None, :]                                              # (L, 1, E)


def _add_pe_kernel(x_ref, o_ref, *, emb_size: int, batch: int, row_tile: int):
    """x_ref/o_ref: (tr, E) rows of the flattened (S*B, E) slab; row r = s*B + b."""
    tr = x_ref.shape[0]

    # Sequence position of every row in this tile: s = floor(row / B).
    row = lax.broadcasted_iota(jnp.int32, (tr, 1), 0) + pl.program_id(0) * row_tile
    if batch & (batch - 1) == 0:                  # power-of-two batch: shift, no div
        s_i = jnp.right_shift(row, int(math.log2(batch)))
    else:
        s_i = row // batch
    s = s_i.astype(jnp.float32)                                        # (tr, 1)

    # Per-column frequency and phase, built once per tile on a single (1, E) row.
    col = lax.broadcasted_iota(jnp.int32, (1, emb_size), 1)            # (1, E)
    pair = jnp.right_shift(col, 1).astype(jnp.float32)                 # floor(e/2)
    inv_freq = jnp.exp(pair * (-2.0 * math.log(10000.0) / emb_size))   # E/2 exps, not ts*E
    phase = (col & 1).astype(jnp.float32) * (math.pi / 2.0)            # cos(x)=sin(x+pi/2)

    # One transcendental per element; (tr,1)*(1,E) broadcasts over sublanes/lanes.
    pe = jnp.sin(s * inv_freq + phase)                                 # (tr, E)

    o_ref[...] = x_ref[...] + pe.astype(x_ref.dtype)


def _tensorcores_per_chip() -> int:
    try:
        kind = jax.devices()[0].device_kind.lower()
    except Exception:
        return 1
    return 2 if "v7" in kind else 1


def _pick_row_tile(n_rows: int, emb: int, itemsize: int, *,
                   vmem_budget_bytes: int, max_tile: int, cores: int) -> int:
    """Largest row tile whose pipeline buffers + in-kernel temps fit the budget."""
    # Native sublane tile: 8 rows for 4-byte dtypes, 16 for bf16, 32 for 8-bit.
    sublane = max(8, 8 * (4 // max(1, itemsize)))
    # x block + out block, double-buffered (4 copies in activation dtype), plus
    # ~3 block-equivalent f32 temporaries (angle / pe / broadcast intermediates).
    bytes_per_row = 4 * emb * itemsize + 3 * emb * 4
    ts = max(sublane, vmem_budget_bytes // bytes_per_row)
    ts = min(ts, max_tile)
    if cores >= 2 and n_rows >= 2 * sublane:
        # v7x only: keep >= 2 grid steps so the "parallel" axis splits across TCs.
        ts = min(ts, (n_rows + 1) // 2)
    if ts >= n_rows:
        return n_rows                       # full-extent block (always layout-legal)
    return max(sublane, (ts // sublane) * sublane)


def sincos_positional_encoding(x: jnp.ndarray,
                               *,
                               vmem_budget_bytes: int = 16 << 20,
                               max_row_tile: int = 1024) -> jnp.ndarray:
    """x: (S, B, E) -> x + sin/cos positional encoding (broadcast over batch)."""
    S, B, E = x.shape
    n_rows = S * B
    x2 = x.reshape(n_rows, E)               # lane-dense slab; pure layout plumbing

    ts = _pick_row_tile(n_rows, E, x.dtype.itemsize,
                        vmem_budget_bytes=vmem_budget_bytes,
                        max_tile=max_row_tile,
                        cores=_tensorcores_per_chip())
    grid = (pl.cdiv(n_rows, ts),)

    kernel = functools.partial(_add_pe_kernel, emb_size=E, batch=B, row_tile=ts)

    out2 = pl.pallas_call(
        kernel,
        out_shape=jax.ShapeDtypeStruct((n_rows, E), x.dtype),
        grid_spec=pltpu.PrefetchScalarGridSpec(
            num_scalar_prefetch=0,
            grid=grid,
            in_specs=[pl.BlockSpec((ts, E), lambda i: (i, 0))],
            out_specs=pl.BlockSpec((ts, E), lambda i: (i, 0)),
        ),
        compiler_params=pltpu.CompilerParams(
            dimension_semantics=("parallel",),   # megacore-friendly on v7x
            vmem_limit_bytes=32 << 20,           # > v5e's 16 MiB default, < v7x's 64 MiB
        ),
    )(x2)

    return out2.reshape(S, B, E)


if __name__ == "__main__":
    # Small shapes consistent with the module's forward: (seq, batch, emb).
    seq, batch, emb, maxlen = 8, 2, 32, 16

    key = jax.random.PRNGKey(0)
    x = jax.random.normal(key, (seq, batch, emb), dtype=jnp.float32)

    out = sincos_positional_encoding(x)
    out = jax.block_until_ready(out)

    pos_embedding = _build_pos_embedding(emb, maxlen)
    ref = x + pos_embedding[:seq, :]

    assert out.shape == (seq, batch, emb)
    assert jnp.allclose(out, ref, atol=5e-5, rtol=5e-5), \
        float(jnp.max(jnp.abs(out - ref)))

    print("KERNEL_OK")
</pallas_src>

<mosaic_0001>
module attributes {stable_mosaic.version = 11 : i64} {
  func.func @_add_pe_kernel(%arg0: i32, %arg1: memref<16x32xf32, #tpu.memory_space<vmem>>, %arg2: memref<16x32xf32, #tpu.memory_space<vmem>>) attributes {dimension_semantics = [#tpu.dimension_semantics<parallel>], iteration_bounds = array<i64: 1>, scalar_prefetch = 0 : i64, scratch_operands = 0 : i64, tpu.core_type = #tpu.core_type<tc>, window_params = [{transform_indices = @transform_0, window_bounds = array<i64: 16, 32>}, {transform_indices = @transform_1, window_bounds = array<i64: 16, 32>}]} {
    %0 = tpu.iota {dimensions = array<i32: 0>} : vector<16x1xi32>
    %c16_i32 = arith.constant 16 : i32
    %1 = arith.muli %arg0, %c16_i32 : i32
    %2 = vector.broadcast %1 : i32 to vector<16x1xi32>
    %3 = arith.addi %0, %2 : vector<16x1xi32>
    %c1_i32 = arith.constant 1 : i32
    %4 = vector.broadcast %c1_i32 : i32 to vector<16x1xi32>
    %5 = arith.shrsi %3, %4 : vector<16x1xi32>
    %6 = arith.sitofp %5 : vector<16x1xi32> to vector<16x1xf32>
    %7 = tpu.iota {dimensions = array<i32: 1>} : vector<1x32xi32>
    %c1_i32_0 = arith.constant 1 : i32
    %8 = vector.broadcast %c1_i32_0 : i32 to vector<1x32xi32>
    %9 = arith.shrsi %7, %8 : vector<1x32xi32>
    %10 = arith.sitofp %9 : vector<1x32xi32> to vector<1x32xf32>
    %cst = arith.constant -0.575646281 : f32
    %11 = vector.broadcast %cst : f32 to vector<1x32xf32>
    %12 = arith.mulf %10, %11 : vector<1x32xf32>
    %13 = math.exp %12 : vector<1x32xf32>
    %c1_i32_1 = arith.constant 1 : i32
    %14 = vector.broadcast %c1_i32_1 : i32 to vector<1x32xi32>
    %15 = arith.andi %7, %14 : vector<1x32xi32>
    %16 = arith.sitofp %15 : vector<1x32xi32> to vector<1x32xf32>
    %cst_2 = arith.constant 1.57079637 : f32
    %17 = vector.broadcast %cst_2 : f32 to vector<1x32xf32>
    %18 = arith.mulf %16, %17 : vector<1x32xf32>
    %19 = vector.broadcast %6 : vector<16x1xf32> to vector<16x32xf32>
    %20 = vector.broadcast %13 : vector<1x32xf32> to vector<16x32xf32>
    %21 = arith.mulf %19, %20 : vector<16x32xf32>
    %22 = vector.broadcast %18 : vector<1x32xf32> to vector<16x32xf32>
    %23 = arith.addf %21, %22 : vector<16x32xf32>
    %24 = math.sin %23 : vector<16x32xf32>
    %c0 = arith.constant 0 : index
    %c0_3 = arith.constant 0 : index
    %25 = vector.load %arg1[%c0, %c0_3] : memref<16x32xf32, #tpu.memory_space<vmem>>, vector<16x32xf32>
    %26 = arith.addf %25, %24 : vector<16x32xf32>
    %c0_4 = arith.constant 0 : index
    %c0_5 = arith.constant 0 : index
    %27 = vector.load %arg2[%c0_4, %c0_5] : memref<16x32xf32, #tpu.memory_space<vmem>>, vector<16x32xf32>
    tpu.vector_store %arg2[%c0_4, %c0_5], %26 {strides = array<i32>} : memref<16x32xf32, #tpu.memory_space<vmem>>, vector<16x32xf32>,
    return
  }
  func.func @transform_0(%arg0: i32) -> (i32, i32) {
    %c0_i32 = arith.constant 0 : i32
    %c0_i32_0 = arith.constant 0 : i32
    return %arg0, %c0_i32 : i32, i32
  }
  func.func @transform_1(%arg0: i32) -> (i32, i32) {
    %c0_i32 = arith.constant 0 : i32
    %c0_i32_0 = arith.constant 0 : i32
    return %arg0, %c0_i32 : i32, i32
  }
}

</mosaic_0001>

<bundles_post_ra>
// kernel: tpu_custom_call.1
= control target key start
LH: loop header
LB: loop body
LE: loop exit
PB: predicated region body
PF: predicated region fallthrough
CT: control target
= control target key end

     0   :  { %6 = vsyncpa [#allocation3], 0  ;;  %s472_s0 = inlined_call_operand.hbm [shape: f32[16,32], index: 0, kind: input, shape index: {}]   ;;  %s473_s1 = inlined_call_operand.hbm [shape: f32[16,32], index: 1, kind: output, shape index: {}]  }
   0x1   :  { %7 = vsyncpa [#allocation4], 0  ;;  %s360_s6 = smov [#allocation2]  }
   0x2   :  { %s13_s7 = sshll.u32 %s360_s6, 4  ;;  %s14_s7 = int_to_ptr.vmem [resolvable:$true] %s13_s7 }
   0x3   :  { %s324_s8 = scalar_lea.vmem %s14_s7, 256  ;;  %p329_p1 = scmp.lt.s32.totalorder %s14_s7, %s14_s7 }
   0x4   :  { %p325_p0 = scmp.ne.s32.totalorder %s14_s7, %s324_s8  ;;  %p330_p2 = scmp.lt.s32.totalorder %s324_s8, %s324_s8 }
   0x6   :  { %p331_p3 = por %p330_p2, %p329_p1 }
   0x8   :  { %p332_p4 = pnand %p331_p3, %p325_p0 }
   0xa   :  { %335 = shalt.err (!%p332_p4)
}
   0xb   :  { %s361_s9 = smov 128   ;;  %s362_s10 = smov 8  }
   0xc   :  { %19 = dma.hbm_to_vmem [thread:$0]  %s472_s0, 256, %s14_s7, [#allocation3], %s361_s9, %s361_s9, %s362_s10  }
   0xd   :  { %356 = dma.done.wait [#allocation3], 256  }
   0xe   :  { %357 = vsyncadd [#allocation3], 4294967040  ;;  %v23_v0 = vlaneseq  ;;  %v363_v42 = vmov 683565275   ;;  %v364_v44 = vmov 2475754826  }
   0xf   :  { %v365_v46 = vmov 2131351028   ;;  %v366_v48 = vmov 2102212464   ;;  %v367_v50 = vmov 920167782  }
  0x10   :  { %v35_v1 = vand.u32 127, %v23_v0  ;;  %v24_v5 = vshrl.u32 %v23_v0, 7  ;;  %v368_v58 = vmov 1326507024   ;;  %s369_s0 = smov [#allocation5]  }
  0x11   :  { %s268_s13 = sshll.u32 %s369_s0, 4  ;;  %s269_s13 = int_to_ptr.vmem [resolvable:$true] %s268_s13 }
  0x12   :  { %v36_v2 = vshra.s32 %v35_v1, 1  ;;  %v25_v7 = vadd.s32 8, %v24_v5  ;;  %v41_v8 = vand.u32 1, %v35_v1  ;;  %v30_v9 = vshra.s32 %v24_v5, 1  ;;  %s336_s14 = scalar_lea.vmem %s269_s13, 256  ;;  %p341_p6 = scmp.lt.s32.totalorder %s269_s13, %s269_s13 }
  0x13   :  { %p337_p5 = scmp.ne.s32.totalorder %s269_s13, %s336_s14  ;;  %p342_p7 = scmp.lt.s32.totalorder %s336_s14, %s336_s14 }
  0x14   :  { %v37_v3 = vcvt.s32.f32 %v36_v2  ;;  %v31_v10 = vshra.s32 %v25_v7, 1  ;;  %v42_v11 = vcvt.s32.f32 %v41_v8  ;;  %v32_v12 = vcvt.s32.f32 %v30_v9 }
  0x15   :  { %p343_p8 = por %p342_p7, %p341_p6 }
  0x16   :  { %v38_v4 = vmul.f32 -0.5756463, %v37_v3  ;;  %v33_v13 = vcvt.s32.f32 %v31_v10  ;;  %v43_v14 = vmul.f32 1.5707964, %v42_v11 }
  0x17   :  { %p344_p9 = pnand %p343_p8, %p337_p5 }
  0x18   :  { %v39_v6 = vmul.f32 1.442695, %v38_v4 }
  0x1a   :  { %306 = vpow2.f32 %v39_v6 }
  0x27   :  { %v307_v15 = vpop.eup %306 }
  0x28   :  { %v44_v16 = vmul.f32 %v307_v15, %v32_v12  ;;  %v45_v17 = vmul.f32 %v307_v15, %v33_v13 }
  0x2a   :  { %v386_v18 = vadd.f32 %v44_v16, %v43_v14  ;;  %v388_v19 = vadd.f32 %v45_v17, %v43_v14 }
  0x2c   :  { %v48_v20 = vand.u32 2147483647, %v386_v18  ;;  %v51_v21 = vand.u32 2139095040, %v386_v18  ;;  %v152_v22 = vand.u32 2147483647, %v388_v19  ;;  %v155_v23 = vand.u32 2139095040, %v388_v19 }
  0x2d   :  { %vm50_vm14 = vcmp.lt.s32.totalorder %v386_v18, 0 }
  0x2e   :  { %v52_v24 = vshrl.u32 %v51_v21, 23  ;;  %v55_v25 = vand.u32 8388607, %v48_v20  ;;  %v156_v26 = vshrl.u32 %v155_v23, 23  ;;  %v159_v27 = vand.u32 8388607, %v152_v22 }
  0x2f   :  { %vm449_vm15 = vcmp.le.f32.partialorder %v48_v20, 0.7853982 }
  0x30   :  { %v280_v28 = vadd.s32 4294967169, %v52_v24  ;;  %v284_v29 = vadd.s32 4294967169, %v156_v26  ;;  %v56_v31 = vor.u32 8388608, %v55_v25  ;;  %v160_v32 = vor.u32 8388608, %v159_v27 }
  0x32   :  { %v58_v30 = vadd.s32 1, %v280_v28  ;;  %v162_v33 = vadd.s32 1, %v284_v29  ;;  %v398_v38 = vshll.u32 %v56_v31, 8  ;;  %v400_v40 = vshll.u32 %v160_v32, 8 }
  0x34   :  { %vm59_vm0 = vcmp.gt.s32.totalorder %v58_v30, 0  ;;  %vm163_vm1 = vcmp.gt.s32.totalorder %v162_v33, 0 }
  0x35   :  { %v60_v34 = vsel %vm59_vm0, %v58_v30, 0  ;;  %v164_v37 = vsel %vm163_vm1, %v162_v33, 0  ;;  %vm154_vm0 = vcmp.lt.s32.totalorder %v388_v19, 0  ;;  %vm153_vm1 = vcmp.le.f32.partialorder %v152_v22, 0.7853982 }
  0x36   :  { %v61_v35 = vshrl.u32 %v60_v34, 5  ;;  %v62_v36 = vand.u32 31, %v60_v34  ;;  %v166_v39 = vand.u32 31, %v164_v37  ;;  %v402_v52 = vshrl.u32 %v164_v37, 5 }
  0x38   :  { %v63_v41 = vsub.s32 32, %v62_v36  ;;  %v65_v43 = vshll.u32 %v363_v42, %v62_v36  ;;  %v68_v45 = vshll.u32 %v364_v44, %v62_v36  ;;  %v71_v47 = vshll.u32 %v365_v46, %v62_v36 }
  0x39   :  { %v74_v49 = vshll.u32 %v366_v48, %v62_v36  ;;  %v77_v51 = vshll.u32 %v367_v50, %v62_v36  ;;  %vm80_vm2 = vcmp.lt.s32.totalorder %v61_v35, 1  ;;  %vm81_vm3 = vcmp.lt.s32.totalorder %v61_v35, 2 }
  0x3a   :  { %v64_v53 = vshrl.u32 %v363_v42, %v63_v41  ;;  %v66_v54 = vshrl.u32 %v364_v44, %v63_v41  ;;  %v69_v55 = vshrl.u32 %v365_v46, %v63_v41  ;;  %v72_v56 = vshrl.u32 %v366_v48, %v63_v41 }
  0x3b   :  { %v75_v57 = vshrl.u32 %v367_v50, %v63_v41  ;;  %v78_v59 = vshrl.u32 %v368_v58, %v63_v41  ;;  %vm83_vm4 = vcmp.lt.s32.totalorder %v61_v35, 4  ;;  %v167_v63 = vsub.s32 32, %v166_v39 }
  0x3c   :  { %v67_v60 = vor.u32 %v66_v54, %v65_v43  ;;  %v70_v61 = vor.u32 %v69_v55, %v68_v45  ;;  %v73_v62 = vor.u32 %v72_v56, %v71_v47  ;;  %vm82_vm5 = vcmp.lt.s32.totalorder %v61_v35, 3 }
  0x3d   :  { %v76_v0 = vor.u32 %v75_v57, %v74_v49  ;;  %v79_v1 = vor.u32 %v78_v59, %v77_v51  ;;  %v169_v2 = vshll.u32 %v363_v42, %v166_v39  ;;  %v172_v10 = vshll.u32 %v364_v44, %v166_v39 }
  0x3e   :  { %v84_v3 = vsel %vm80_vm2, %v64_v53, %v67_v60  ;;  %v85_v4 = vsel %vm83_vm4, %v73_v62, 2102212464  ;;  %v88_v5 = vsel %vm80_vm2, %v67_v60, %v70_v61  ;;  %v92_v6 = vsel %vm80_vm2, %v70_v61, %v73_v62 }
  0x3f   :  { %v86_v7 = vsel %vm82_vm5, %v70_v61, %v85_v4  ;;  %v89_v8 = vsel %vm83_vm4, %v76_v0, 920167782  ;;  %v93_v9 = vsel %vm83_vm4, %v79_v1, 1326507024  ;;  %v168_v13 = vshrl.u32 %v363_v42, %v167_v63 }
  0x40   :  { %v90_v11 = vsel %vm82_vm5, %v73_v62, %v89_v8  ;;  %v94_v12 = vsel %vm82_vm5, %v76_v0, %v93_v9  ;;  %v170_v14 = vshrl.u32 %v364_v44, %v167_v63  ;;  %v87_v15 = vsel %vm81_vm3, %v84_v3, %v86_v7 }
  0x41   :  { %v91_v16 = vsel %vm81_vm3, %v88_v5, %v90_v11  ;;  %v95_v17 = vsel %vm81_vm3, %v92_v6, %v94_v12  ;;  %v173_v21 = vshrl.u32 %v365_v46, %v167_v63  ;;  %v175_v29 = vshll.u32 %v365_v46, %v166_v39 }
  0x42   :  { %v411_v23 = vmul.u32.u64.low %v398_v38, %v95_v17  ;;  %v412_v24 = vmul.u32.u64.high %v398_v38, %v95_v17, %v411_v23  ;;  %v415_v25 = vmul.u32.u64.low %v398_v38, %v91_v16  ;;  %v416_v26 = vmul.u32.u64.high %v398_v38, %v91_v16, %v415_v25 }
  0x43   :  { %v171_v27 = vor.u32 %v170_v14, %v169_v2  ;;  %v174_v28 = vor.u32 %v173_v21, %v172_v10  ;;  %v176_v30 = vshrl.u32 %v366_v48, %v167_v63  ;;  %v178_v31 = vshll.u32 %v366_v48, %v166_v39 }
  0x44   :  { %v179_v32 = vshrl.u32 %v367_v50, %v167_v63  ;;  %v181_v33 = vshll.u32 %v367_v50, %v166_v39  ;;  %v182_v34 = vshrl.u32 %v368_v58, %v167_v63  ;;  %v103_v35 = vmul.u32 %v398_v38, %v87_v15 }
  0x45   :  { %v177_v36 = vor.u32 %v176_v30, %v175_v29  ;;  %vm184_vm6 = vcmp.lt.s32.totalorder %v402_v52, 1  ;;  %vm185_vm7 = vcmp.lt.s32.totalorder %v402_v52, 2  ;;  %vm105_vm8 = vc.u32 %v412_v24, %v415_v25 }
  0x46   :  { %v106_v37 = vadd.s32 1, %v416_v26  ;;  %v180_v41 = vor.u32 %v179_v32, %v178_v31  ;;  %vm186_vm9 = vcmp.lt.s32.totalorder %v402_v52, 3  ;;  %v183_v42 = vor.u32 %v182_v34, %v181_v33 }
  0x47   :  { %vm187_vm10 = vcmp.lt.s32.totalorder %v402_v52, 4  ;;  %v188_v43 = vsel %vm184_vm6, %v168_v13, %v171_v27  ;;  %v192_v39 = vsel %vm184_vm6, %v171_v27, %v174_v28  ;;  %v196_v46 = vsel %vm184_vm6, %v174_v28, %v177_v36 }
  0x48   :  { %v107_v44 = vsel %vm105_vm8, %v106_v37, %v416_v26  ;;  %v189_v38 = vsel %vm187_vm10, %v177_v36, 2102212464  ;;  %v193_v45 = vsel %vm187_vm10, %v180_v41, 920167782  ;;  %v197_v50 = vsel %vm187_vm10, %v183_v42, 1326507024 }
  0x49   :  { %v108_v47 = vadd.s32 %v107_v44, %v103_v35  ;;  %v190_v48 = vsel %vm186_vm9, %v174_v28, %v189_v38  ;;  %v194_v49 = vsel %vm186_vm9, %v177_v36, %v193_v45  ;;  %v198_v54 = vsel %vm186_vm9, %v180_v41, %v197_v50 }
  0x4a   :  { %v191_v51 = vsel %vm185_vm7, %v188_v43, %v190_v48  ;;  %v195_v53 = vsel %vm185_vm7, %v192_v39, %v194_v49  ;;  %v199_v56 = vsel %vm185_vm7, %v196_v46, %v198_v54  ;;  %v104_v11 = vadd.s32 %v415_v25, %v412_v24 }
  0x4b   :  { %v109_v55 = vadd.s32 536870912, %v108_v47  ;;  %v433_v57 = vmul.u32.u64.low %v400_v40, %v195_v53  ;;  %v434_v58 = vmul.u32.u64.high %v400_v40, %v195_v53, %v433_v57  ;;  %v207_v62 = vmul.u32 %v400_v40, %v191_v51 }
  0x4c   :  { %v437_v59 = vmul.u32.u64.low %v400_v40, %v199_v56  ;;  %v438_v60 = vmul.u32.u64.high %v400_v40, %v199_v56, %v437_v59  ;;  %vm140_vm5 = vweird.f32 %v386_v18  ;;  %vm260_vm6 = vcmask 261120  }
  0x4d   :  { %v110_v61 = vshrl.u32 %v109_v55, 30  ;;  %v210_v0 = vadd.s32 1, %v434_v58  ;;  %vm244_vm10 = vweird.f32 %v388_v19 }
  0x4e   :  { %vm209_vm11 = vc.u32 %v438_v60, %v433_v57  ;;  %v208_v31 = vadd.s32 %v433_v57, %v438_v60 }
  0x4f   :  { %v111_v63 = vshll.u32 %v110_v61, 30  ;;  %v211_v52 = vsel %vm209_vm11, %v210_v0, %v434_v58  ;;  %v134_v36 = vsub.s32 4, %v110_v61 }
  0x50   :  { %v212_v2 = vadd.s32 %v211_v52, %v207_v62  ;;  %v256_v52 = vld [vmem:[#allocation2] sm:$0xff] }
  0x51   :  { %v112_v1 = vsub.s32 %v108_v47, %v111_v63  ;;  %v135_v45 = vsel %vm50_vm14, %v134_v36, %v110_v61 }
  0x52   :  { %v213_v4 = vadd.s32 536870912, %v212_v2  ;;  %v137_v20 = vsel %vm449_vm15, 0, %v135_v45 }
  0x53   :  { %v114_v3 = vsub.s32 0, %v112_v1  ;;  %v141_v53 = vadd.s32 3, %v137_v20 }
  0x54   :  { %v214_v6 = vshrl.u32 %v213_v4, 30 }
  0x55   :  { %v281_v5 = vmin.u32 %v114_v3, %v112_v1  ;;  %v142_v58 = vand.u32 3, %v141_v53 }
  0x56   :  { %v215_v8 = vshll.u32 %v214_v6, 30  ;;  %v238_v51 = vsub.s32 4, %v214_v6 }
  0x57   :  { %v116_v7 = vclz %v281_v5  ;;  %vm147_vm2 = vcmp.eq.s32.totalorder %v142_v58, 2  ;;  %vm144_vm3 = vcmp.eq.s32.totalorder %v142_v58, 0  ;;  %vm143_vm4 = vcmp.lt.s32.totalorder %v142_v58, 2 }
  0x58   :  { %v216_v10 = vsub.s32 %v212_v2, %v215_v8  ;;  %v239_v56 = vsel %vm154_vm0, %v238_v51, %v214_v6 }
  0x59   :  { %v282_v9 = vadd.s32 4294967294, %v116_v7  ;;  %v241_v59 = vsel %vm153_vm1, 0, %v239_v56 }
  0x5a   :  { %v218_v12 = vsub.s32 0, %v216_v10  ;;  %v245_v63 = vadd.s32 3, %v241_v59 }
  0x5b   :  { %vm283_vm12 = vcmp.lt.s32.totalorder %v282_v9, 0 }
  0x5c   :  { %v119_v40 = vsel %vm283_vm12, 0, %v282_v9  ;;  %v285_v16 = vmin.u32 %v218_v12, %v216_v10  ;;  %v246_v3 = vand.u32 3, %v245_v63 }
  0x5d   :  { %v120_v13 = vsub.s32 32, %v119_v40  ;;  %v121_v14 = vshll.u32 %v112_v1, %v119_v40  ;;  %v124_v15 = vsub.s32 4294967266, %v119_v40 }
  0x5e   :  { %v220_v23 = vclz %v285_v16  ;;  %vm251_vm7 = vcmp.eq.s32.totalorder %v246_v3, 2  ;;  %vm248_vm8 = vcmp.eq.s32.totalorder %v246_v3, 0  ;;  %vm247_vm9 = vcmp.lt.s32.totalorder %v246_v3, 2 }
  0x5f   :  { %v122_v17 = vshrl.u32 %v104_v11, %v120_v13  ;;  %v125_v21 = vadd.s32 127, %v124_v15  ;;  %v257_v11 = vld [vmem:[#allocation2 + $0x8] sm:$0xff] }
  0x60   :  { %v286_v28 = vadd.s32 4294967294, %v220_v23 }
  0x61   :  { %v123_v26 = vor.u32 %v122_v17, %v121_v14  ;;  %v126_v27 = vshll.u32 %v125_v21, 23 }
  0x62   :  { %vm287_vm13 = vcmp.lt.s32.totalorder %v286_v28, 0 }
  0x63   :  { %v127_v29 = vor.u32 4788187, %v126_v27  ;;  %v130_v30 = vcvt.s32.f32 %v123_v26  ;;  %v223_v24 = vsel %vm287_vm13, 0, %v286_v28 }
  0x64   :  { %v224_v25 = vsub.s32 32, %v223_v24  ;;  %v225_v33 = vshll.u32 %v216_v10, %v223_v24  ;;  %v228_v34 = vsub.s32 4294967266, %v223_v24 }
  0x65   :  { %v128_v32 = vand.u32 2147483647, %v127_v29 }
  0x66   :  { %v226_v37 = vshrl.u32 %v208_v31, %v224_v25  ;;  %v229_v41 = vadd.s32 127, %v228_v34 }
  0x67   :  { %v131_v35 = vmul.f32 %v130_v30, %v128_v32 }
  0x68   :  { %v227_v39 = vor.u32 %v226_v37, %v225_v33  ;;  %v230_v44 = vshll.u32 %v229_v41, 23 }
  0x69   :  { %v132_v43 = vxor.u32 2147483648, %v131_v35 }
  0x6a   :  { %v231_v47 = vor.u32 4788187, %v230_v44  ;;  %v234_v48 = vcvt.s32.f32 %v227_v39 }
  0x6b   :  { %v133_v38 = vsel %vm50_vm14, %v132_v43, %v131_v35 }
  0x6c   :  { %v136_v46 = vsel %vm449_vm15, %v386_v18, %v133_v38  ;;  %v232_v49 = vand.u32 2147483647, %v231_v47 }
  0x6d   :  { %308 = vcosq.f32 %v136_v46 }
  0x6e   :  { %310 = vsinq.f32 %v136_v46  ;;  %v235_v50 = vmul.f32 %v234_v48, %v232_v49 }
  0x70   :  { %v236_v54 = vxor.u32 2147483648, %v235_v50 }
  0x72   :  { %v237_v55 = vsel %vm154_vm0, %v236_v54, %v235_v50 }
  0x73   :  { %v240_v57 = vsel %vm153_vm1, %v388_v19, %v237_v55 }
  0x74   :  { %312 = vcosq.f32 %v240_v57 }
  0x75   :  { %314 = vsinq.f32 %v240_v57 }
  0x7a   :  { %v309_v60 = vpop.eup %308 }
  0x7b   :  { %v311_v61 = vpop.eup %310  ;;  %v148_v62 = vxor.u32 2147483648, %v309_v60 }
  0x7c   :  { %v145_v0 = vxor.u32 2147483648, %v311_v61 }
  0x7d   :  { %v149_v22 = vsel %vm147_vm2, %v148_v62, %v311_v61 }
  0x7e   :  { %v146_v1 = vsel %vm144_vm3, %v309_v60, %v145_v0 }
  0x7f   :  { %v150_v2 = vsel %vm143_vm4, %v146_v1, %v149_v22 }
  0x80   :  { %v151_v4 = vsel %vm140_vm5, nan, %v150_v2 }
  0x81   :  { %v258_v5 = vadd.f32 %v256_v52, %v151_v4  ;;  %v313_v6 = vpop.eup %312 }
  0x82   :  { %v315_v7 = vpop.eup %314  ;;  %v252_v8 = vxor.u32 2147483648, %v313_v6 }
  0x83   :  { %261 = vst.msk [vmem:[#allocation5] sm:$0xff] %vm260_vm6, %v258_v5  ;;  %v249_v9 = vxor.u32 2147483648, %v315_v7 }
  0x84   :  { %v253_v18 = vsel %vm251_vm7, %v252_v8, %v315_v7 }
  0x85   :  { %v250_v10 = vsel %vm248_vm8, %v313_v6, %v249_v9 }
  0x86   :  { %v254_v40 = vsel %vm247_vm9, %v250_v10, %v253_v18 }
  0x87   :  { %v255_v12 = vsel %vm244_vm10, nan, %v254_v40 }
  0x88   :  { %v259_v13 = vadd.f32 %v257_v11, %v255_v12 }
  0x8a   :  { %262 = vst.msk [vmem:[#allocation5 + $0x8] sm:$0xff] %vm260_vm6, %v259_v13 }
  0x8b   :  { %347 = shalt.err (!%p344_p9)
}
  0x8c   :  { %274 = dma.vmem_to_hbm [thread:$0]  %s269_s13, 256, %s473_s1, [#allocation4], %s361_s9, %s361_s9, %s362_s10  }
  0x8d   :  { %358 = dma.done.wait [#allocation4], 256  }
  0x8e   :  { %359 = vsyncadd [#allocation4], 4294967040 }
  0x8f   :  { %278 = vsyncpa [#allocation3], 1 }
  0x90   :  { %279 = vsyncpa [#allocation4], 1 }

</bundles_post_ra>
